<compile_context>
chip_gen: v7x
topology: tpu7x:2x2x1
jax: 0.10.0
libtpu: 0.0.40
codegen_flags: <defaults>
</compile_context>

<pallas_src>
import math

import jax
import jax.numpy as jnp
from jax.experimental import pallas as pl
from jax.experimental.pallas import tpu as pltpu


def _add_inverse_kernel(x_ref, o_ref):
    # x_ref: (TB, TR, 128)        o_ref: (TB, 2, TR, 128)
    x = x_ref[...]
    o_ref[:, 0, :, :] = x
    o_ref[:, 1, :, :] = jnp.asarray(1, dtype=x.dtype) - x


def _vmem_budget_bytes():
    """(per-step budget covering double-buffered in+out, physical VMEM capacity)."""
    try:
        cap = pltpu.get_tpu_info().vmem_capacity_bytes
    except Exception:
        cap = 64 << 20                  # conservative default (v7x physical VMEM)
    if cap <= (80 << 20):               # v7x-class: 64 MiB physical
        return 24 << 20, cap
    return 48 << 20, cap                # v5e / v6e: 128 MiB physical


def add_inverse(x, dim=-3, *, small_fallback_bytes=1 << 20):
    ndim = x.ndim
    axis = dim if dim >= 0 else ndim + dim
    one = jnp.asarray(1, dtype=x.dtype)

    # Pallas path implements the module default (channel axis) for [..., C, H, W].
    # TODO(synk): Pallas path for arbitrary `dim` values is not implemented; XLA path
    # below is semantically identical.
    if ndim < 3 or axis != ndim - 3:
        return jnp.concatenate([x, one - x], axis=dim)

    lead = x.shape[:-3]
    C, H, W = x.shape[-3:]
    B = math.prod(lead)                 # 1 for a single image
    N = C * H * W
    itemsize = jnp.dtype(x.dtype).itemsize

    # Tiny inputs: fixed pallas_call / grid overhead dominates -> let XLA fuse it.
    # TODO(synk): lane-dense Pallas tiling requires C*H*W % 128 == 0; otherwise fall back.
    if 3 * B * N * itemsize < small_fallback_bytes or N % 128 != 0:
        return jnp.concatenate([x, one - x], axis=dim)

    # Lane-dense view: each image is (R, 128); output (B, 2, R, 128) is exactly
    # (B, 2C, H, W) in memory.
    R = N // 128
    x3 = x.reshape(B, R, 128)

    budget, vmem_cap = _vmem_budget_bytes()
    # Rows (of 128 lanes) per step: 2x double buffer * (1 input + 2 output) copies.
    row_cap = max(8, budget // (2 * 3 * 128 * itemsize))

    if R <= row_cap:
        # Whole image(s) per step; pack several batch elements if they fit.
        TR = R
        TB = max(1, min(B, row_cap // R))
        if B >= 2:
            # Keep >= 2 balanced grid steps so both v7x TensorCores get work, but
            # only if the halved block still moves multi-MiB traffic (on 1-TC
            # chips shrinking small blocks just adds per-step overhead).
            tb_half = pl.cdiv(B, 2)
            if 3 * tb_half * R * 128 * itemsize >= (2 << 20):
                TB = min(TB, tb_half)
        nb = pl.cdiv(B, TB)
        TB = pl.cdiv(B, nb)                              # rebalance ragged batch tiles
    else:
        # A single image exceeds the budget: tile its rows instead.
        TB = 1
        TR = (row_cap // 8) * 8
        nr = pl.cdiv(R, TR)
        TR = min(R, ((pl.cdiv(R, nr) + 7) // 8) * 8)     # rebalance, keep 8-aligned
        nb = B
    nr = pl.cdiv(R, TR)

    block_bytes = 2 * 3 * TB * TR * 128 * itemsize       # double-buffered in+out
    vmem_limit = int(min(vmem_cap * 7 // 8,
                         max(block_bytes + (4 << 20), 32 << 20)))

    out = pl.pallas_call(
        _add_inverse_kernel,
        out_shape=jax.ShapeDtypeStruct((B, 2, R, 128), x.dtype),
        grid=(nb, nr),
        in_specs=[pl.BlockSpec((TB, TR, 128), lambda b, r: (b, r, 0))],
        out_specs=pl.BlockSpec((TB, 2, TR, 128), lambda b, r: (b, 0, r, 0)),
        compiler_params=pltpu.CompilerParams(
            dimension_semantics=("parallel", "parallel"),
            vmem_limit_bytes=vmem_limit),
    )(x3)

    return out.reshape(lead + (2 * C, H, W))


if __name__ == "__main__":
    key = jax.random.PRNGKey(0)

    # 1) Batched path [B, C, H, W] -> [B, 2C, H, W] (small spec shape; force Pallas path).
    B, C, H, W = 2, 4, 16, 16
    x = jax.random.uniform(key, (B, C, H, W), dtype=jnp.float32)
    out = add_inverse(x, small_fallback_bytes=0)
    jax.block_until_ready(out)
    ref = jnp.concatenate([x, 1.0 - x], axis=-3)
    assert out.shape == (B, 2 * C, H, W)
    assert jnp.allclose(out, ref, atol=1e-6, rtol=1e-6)

    # 2) Single-image path [C, H, W] -> [2C, H, W].
    out1 = add_inverse(x[0], small_fallback_bytes=0)
    jax.block_until_ready(out1)
    ref1 = jnp.concatenate([x[0], 1.0 - x[0]], axis=-3)
    assert out1.shape == (2 * C, H, W)
    assert jnp.allclose(out1, ref1, atol=1e-6, rtol=1e-6)

    # 3) Odd batch, C=3 (exercises dense (R,128) layout and multi-batch block).
    x2 = jax.random.uniform(jax.random.PRNGKey(1), (3, 3, 64, 64), dtype=jnp.float32)
    out2 = add_inverse(x2, small_fallback_bytes=0)
    jax.block_until_ready(out2)
    ref2 = jnp.concatenate([x2, 1.0 - x2], axis=-3)
    assert jnp.allclose(out2, ref2, atol=1e-6, rtol=1e-6)

    # 4) Larger spatial size (exercises the >= 2-step grid / megacore path).
    x3 = jax.random.uniform(jax.random.PRNGKey(2), (2, 3, 256, 256), dtype=jnp.float32)
    out3 = add_inverse(x3, small_fallback_bytes=0)
    jax.block_until_ready(out3)
    ref3 = jnp.concatenate([x3, 1.0 - x3], axis=-3)
    assert jnp.allclose(out3, ref3, atol=1e-6, rtol=1e-6)

    print("KERNEL_OK")
</pallas_src>

<mosaic_0001>
module attributes {stable_mosaic.version = 11 : i64} {
  func.func @_add_inverse_kernel(%arg0: i32, %arg1: i32, %arg2: memref<2x8x128xf32, #tpu.memory_space<vmem>>, %arg3: memref<2x2x8x128xf32, #tpu.memory_space<vmem>>) attributes {dimension_semantics = [#tpu.dimension_semantics<parallel>, #tpu.dimension_semantics<parallel>], iteration_bounds = array<i64: 1, 1>, scalar_prefetch = 0 : i64, scratch_operands = 0 : i64, tpu.core_type = #tpu.core_type<tc>, window_params = [{transform_indices = @transform_0, window_bounds = array<i64: 2, 8, 128>}, {transform_indices = @transform_1, window_bounds = array<i64: 2, 2, 8, 128>}]} {
    %c0 = arith.constant 0 : index
    %c0_0 = arith.constant 0 : index
    %c0_1 = arith.constant 0 : index
    %0 = vector.load %arg2[%c0, %c0_0, %c0_1] : memref<2x8x128xf32, #tpu.memory_space<vmem>>, vector<2x8x128xf32>
    %c0_2 = arith.constant 0 : index
    %c0_3 = arith.constant 0 : index
    %c0_4 = arith.constant 0 : index
    %c0_5 = arith.constant 0 : index
    %1 = vector.load %arg3[%c0_2, %c0_3, %c0_4, %c0_5] : memref<2x2x8x128xf32, #tpu.memory_space<vmem>>, vector<2x1x8x128xf32>
    %2 = vector.shape_cast %1 : vector<2x1x8x128xf32> to vector<2x8x128xf32>
    %3 = vector.shape_cast %0 : vector<2x8x128xf32> to vector<2x1x8x128xf32>
    tpu.vector_store %arg3[%c0_2, %c0_3, %c0_4, %c0_5], %3 {strides = array<i32>} : memref<2x2x8x128xf32, #tpu.memory_space<vmem>>, vector<2x1x8x128xf32>,
    %cst = arith.constant 1.000000e+00 : f32
    %4 = vector.broadcast %cst : f32 to vector<2x8x128xf32>
    %5 = arith.subf %4, %0 : vector<2x8x128xf32>
    %c0_6 = arith.constant 0 : index
    %c1 = arith.constant 1 : index
    %c0_7 = arith.constant 0 : index
    %c0_8 = arith.constant 0 : index
    %6 = vector.load %arg3[%c0_6, %c1, %c0_7, %c0_8] : memref<2x2x8x128xf32, #tpu.memory_space<vmem>>, vector<2x1x8x128xf32>
    %7 = vector.shape_cast %6 : vector<2x1x8x128xf32> to vector<2x8x128xf32>
    %8 = vector.shape_cast %5 : vector<2x8x128xf32> to vector<2x1x8x128xf32>
    tpu.vector_store %arg3[%c0_6, %c1, %c0_7, %c0_8], %8 {strides = array<i32>} : memref<2x2x8x128xf32, #tpu.memory_space<vmem>>, vector<2x1x8x128xf32>,
    return
  }
  func.func @transform_0(%arg0: i32, %arg1: i32) -> (i32, i32, i32) {
    %c0_i32 = arith.constant 0 : i32
    %c0_i32_0 = arith.constant 0 : i32
    return %arg0, %arg1, %c0_i32 : i32, i32, i32
  }
  func.func @transform_1(%arg0: i32, %arg1: i32) -> (i32, i32, i32, i32) {
    %c0_i32 = arith.constant 0 : i32
    %c0_i32_0 = arith.constant 0 : i32
    %c0_i32_1 = arith.constant 0 : i32
    return %arg0, %c0_i32, %arg1, %c0_i32_0 : i32, i32, i32, i32
  }
}

</mosaic_0001>

<bundles_post_ra>
// kernel: tpu_custom_call.1
= control target key start
LH: loop header
LB: loop body
LE: loop exit
PB: predicated region body
PF: predicated region fallthrough
CT: control target
= control target key end

     0   :  { %6 = vsyncpa [#allocation3], 0  ;;  %s145_s0 = inlined_call_operand.hbm [shape: f32[2,8,128], index: 0, kind: input, shape index: {}]   ;;  %s146_s1 = inlined_call_operand.hbm [shape: f32[2,2,8,128], index: 1, kind: output, shape index: {}]  }
   0x1   :  { %7 = vsyncpa [#allocation4], 0  ;;  %s101_s6 = smov [#allocation2]   ;;  %s53_s10 = scalar_lea.hbm %s145_s0, 256 }
   0x2   :  { %s13_s7 = sshll.u32 %s101_s6, 4  ;;  %p54_p0 = scmp.ne.s32.totalorder %s145_s0, %s53_s10  ;;  %s14_s7 = int_to_ptr.vmem [resolvable:$true] %s13_s7 }
   0x3   :  { %p57_p1 = scmp.lt.u32.totalorder %s53_s10, %s145_s0 }
   0x5   :  { %p59_p2 = pnand %p57_p1, %p54_p0 }
   0x7   :  { %62 = shalt.err (!%p59_p2)
}
   0x8   :  { %s63_s15 = scalar_lea.vmem %s14_s7, 256  ;;  %p68_p4 = scmp.lt.s32.totalorder %s14_s7, %s14_s7 }
   0x9   :  { %p64_p3 = scmp.ne.s32.totalorder %s14_s7, %s63_s15  ;;  %p69_p5 = scmp.lt.s32.totalorder %s63_s15, %s63_s15 }
   0xb   :  { %p70_p6 = por %p69_p5, %p68_p4 }
   0xd   :  { %p71_p7 = pnand %p70_p6, %p64_p3 }
   0xf   :  { %74 = shalt.err (!%p71_p7)
}
  0x10   :  { %s102_s16 = smov 128   ;;  %s103_s17 = smov 8  }
  0x11   :  { %19 = dma.hbm_to_vmem [thread:$0]  %s145_s0, 256, %s14_s7, [#allocation3], %s102_s16, %s102_s16, %s103_s17  }
  0x12   :  { %97 = dma.done.wait [#allocation3], 256  }
  0x13   :  { %98 = vsyncadd [#allocation3], 4294967040  ;;  %s104_s20 = smov [#allocation5]   ;;  %v23_v0 = vld [vmem:[#allocation2] sm:$0xff]  ;;  %v24_v1 = vld [vmem:[#allocation2 + $0x8] sm:$0xff] }
  0x14   :  { %s37_s21 = sshll.u32 %s104_s20, 4  ;;  %25 = vst [vmem:[#allocation5] sm:$0xff] %v23_v0  ;;  %26 = vst [vmem:[#allocation5 + $0x10] sm:$0xff] %v24_v1  ;;  %v27_v2 = vsub.f32 1.0, %v23_v0  ;;  %v28_v3 = vsub.f32 1.0, %v24_v1  ;;  %s38_s21 = int_to_ptr.vmem [resolvable:$true] %s37_s21 }
  0x15   :  { %s75_s22 = scalar_lea.vmem %s38_s21, 512  ;;  %p80_p9 = scmp.lt.s32.totalorder %s38_s21, %s38_s21 }
  0x16   :  { %30 = vst [vmem:[#allocation5 + $0x8] sm:$0xff] %v27_v2  ;;  %31 = vst [vmem:[#allocation5 + $0x18] sm:$0xff] %v28_v3  ;;  %p76_p8 = scmp.ne.s32.totalorder %s38_s21, %s75_s22  ;;  %p81_p10 = scmp.lt.s32.totalorder %s75_s22, %s75_s22 }
  0x18   :  { %p82_p11 = por %p81_p10, %p80_p9 }
  0x1a   :  { %p83_p12 = pnand %p82_p11, %p76_p8 }
  0x1c   :  { %86 = shalt.err (!%p83_p12)
}
  0x1d   :  { %s87_s24 = scalar_lea.hbm %s146_s1, 512 }
  0x1e   :  { %p88_p13 = scmp.ne.s32.totalorder %s146_s1, %s87_s24  ;;  %p91_p0 = scmp.lt.u32.totalorder %s87_s24, %s146_s1 }
  0x20   :  { %p93_p1 = pnand %p91_p0, %p88_p13 }
  0x22   :  { %96 = shalt.err (!%p93_p1)
}
  0x23   :  { %43 = dma.vmem_to_hbm [thread:$0]  %s38_s21, 512, %s146_s1, [#allocation4], %s102_s16, %s102_s16, %s103_s17  }
  0x24   :  { %99 = dma.done.wait [#allocation4], 512  }
  0x25   :  { %100 = vsyncadd [#allocation4], 4294966784 }
  0x26   :  { %47 = vsyncpa [#allocation3], 1 }
  0x27   :  { %48 = vsyncpa [#allocation4], 1 }

</bundles_post_ra>
